<compile_context>
chip_gen: v7x
topology: tpu7x:2x2x1
jax: 0.10.0
libtpu: 0.0.40
codegen_flags: <defaults>
</compile_context>

<pallas_src>
import functools

import jax
import jax.numpy as jnp
import numpy as np
from jax.experimental import pallas as pl
from jax.experimental.pallas import tpu as pltpu

EPS = 1e-5


def _lfsurv_kernel(x_ref, clin_ref, bn1_ref, w1l_ref, w1c_ref, head_ref,
                   out_ref,
                   xstat_ref, a1_ref, bias1_ref, hstat_ref, w2c_ref, h_ref,
                   *, batch, tile_b, mxu_dtype):
    k = pl.program_id(0)          # pass index: 0 = x stats, 1 = fc1+tanh, 2 = fc2
    t = pl.program_id(1)          # batch-tile index
    inv_b = 1.0 / batch

    # ---------------- pass 0: BN1 statistics over x -------------------------
    @pl.when(jnp.logical_and(k == 0, t == 0))
    def _init_x_stats():
        xstat_ref[...] = jnp.zeros_like(xstat_ref)

    @pl.when(k == 0)
    def _pass0():
        x = x_ref[...].astype(jnp.float32)
        xstat_ref[0:1, :] = xstat_ref[0:1, :] + jnp.sum(x, axis=0, keepdims=True)
        xstat_ref[1:2, :] = xstat_ref[1:2, :] + jnp.sum(x * x, axis=0, keepdims=True)

    # ------------- finalize BN1; fold its shift through fc1 -----------------
    @pl.when(jnp.logical_and(k == 1, t == 0))
    def _finalize_bn1():
        g1 = bn1_ref[0:1, :]
        be1 = bn1_ref[1:2, :]
        mean1 = xstat_ref[0:1, :] * inv_b
        var1 = jnp.maximum(xstat_ref[1:2, :] * inv_b - mean1 * mean1, 0.0)
        a1 = jax.lax.rsqrt(var1 + EPS) * g1            # (1, input_n) BN1 scale
        a1_ref[...] = a1
        shift1 = be1 - mean1 * a1                      # (1, input_n) BN1 shift
        # One-time M=1 matmul folds the BN1 shift + fc1 bias into a single row.
        bias1_ref[...] = head_ref[0:1, :] + jnp.dot(
            shift1, w1l_ref[...].astype(jnp.float32),
            preferred_element_type=jnp.float32)
        hstat_ref[...] = jnp.zeros_like(hstat_ref)

    # -------- pass 1: fc1 + tanh, stash h, accumulate BN2 statistics --------
    @pl.when(k == 1)
    def _pass1():
        xs = x_ref[...].astype(jnp.float32) * a1_ref[...]     # BN1 scale (f32 VPU)
        h = jnp.dot(xs.astype(mxu_dtype), w1l_ref[...],
                    preferred_element_type=jnp.float32)       # MXU
        clin = clin_ref[...].astype(jnp.float32)              # (tile_b, 4)
        w1c = w1c_ref[...]                                    # (4, L)
        h = (h + bias1_ref[...]
             + clin[:, 0:1] * w1c[0:1, :]
             + clin[:, 1:2] * w1c[1:2, :]
             + clin[:, 2:3] * w1c[2:3, :]
             + clin[:, 3:4] * w1c[3:4, :])
        h = jnp.tanh(h)                                       # EUP slot
        row0 = pl.multiple_of(t * tile_b, 8)
        h_ref[pl.ds(row0, tile_b), :] = h
        hstat_ref[0:1, :] = hstat_ref[0:1, :] + jnp.sum(h, axis=0, keepdims=True)
        hstat_ref[1:2, :] = hstat_ref[1:2, :] + jnp.sum(h * h, axis=0, keepdims=True)

    # ----------------- finalize BN2; fuse it into fc2 -----------------------
    @pl.when(jnp.logical_and(k == 2, t == 0))
    def _finalize_bn2():
        g2 = head_ref[1:2, :]
        be2 = head_ref[2:3, :]
        w2 = head_ref[3:4, :]
        mean2 = hstat_ref[0:1, :] * inv_b
        var2 = jnp.maximum(hstat_ref[1:2, :] * inv_b - mean2 * mean2, 0.0)
        a2 = jax.lax.rsqrt(var2 + EPS) * g2
        w2c_ref[0:1, :] = a2 * w2                             # w2_eff
        w2c_ref[1:2, :] = (be2 - mean2 * a2) * w2             # per-lane bias row

    # ------ pass 2: fused BN2 + fc2 from the VMEM-resident hidden layer -----
    @pl.when(k == 2)
    def _pass2():
        row0 = pl.multiple_of(t * tile_b, 8)
        h = h_ref[pl.ds(row0, tile_b), :]
        out_ref[...] = jnp.sum(h * w2c_ref[0:1, :] + w2c_ref[1:2, :],
                               axis=-1, keepdims=True)


def _choose_tile(batch, target=512):
    """Largest multiple of 8 that divides `batch` and is <= target (else full batch)."""
    if batch % 8 != 0 or batch <= 8:
        return batch
    t = min(target, batch)
    t -= t % 8
    while batch % t != 0:
        t -= 8
    return t


def _vmem_limit_bytes(batch, input_n, l2, tile_b, x_bytes, w_bytes):
    lane = lambda n: -(-n // 128) * 128
    sub = lambda n: -(-n // 8) * 8
    est = 0
    est += 2 * tile_b * lane(input_n) * x_bytes                       # x tile (double buffer)
    est += 2 * tile_b * lane(4) * 4                                   # clinical tile
    est += 2 * tile_b * lane(1) * 4                                   # output tile
    est += 2 * sub(input_n) * lane(l2) * w_bytes                      # resident w1_latent
    est += 2 * (sub(2) * lane(input_n) + 2 * sub(4) * lane(l2)) * 4   # bn1, w1_clin, head
    est += sub(batch) * lane(l2) * 4                                  # h scratch
    est += (sub(3) * lane(input_n) + sub(6) * lane(l2)) * 4           # stat / fold scratches
    return int(min(100 << 20, max(32 << 20, 2 * est)))


@functools.partial(jax.jit, static_argnames=("tile_b",))
def lfsurv_forward(latent, clin, params, tile_b=None):
    """latent: (B, input_n) f32/bf16; clin: (B, 4) = concat([c1..c4], 1).

    Returns y_pred: (B, 1) float32, matching LFSurv.forward(..., s_dropout=False)
    in training mode (batch-statistics BatchNorm).
    """
    batch, input_n = latent.shape
    l2 = params["head"].shape[1]
    if tile_b is None:
        tile_b = _choose_tile(batch)
    assert batch % tile_b == 0 and (tile_b % 8 == 0 or tile_b == batch)
    num_tiles = batch // tile_b
    mxu_dtype = params["w1_latent"].dtype

    def tile_map(k, t):       # x / clin: pinned during pass 2 (no redundant re-fetch)
        return (jnp.where(k < 2, t, 0), 0)

    def out_map(k, t):        # output only touched during pass 2
        return (jnp.where(k == 2, t, 0), 0)

    def fixed_map(k, t):
        return (0, 0)

    kernel = functools.partial(_lfsurv_kernel, batch=batch, tile_b=tile_b,
                               mxu_dtype=mxu_dtype)

    return pl.pallas_call(
        kernel,
        out_shape=jax.ShapeDtypeStruct((batch, 1), jnp.float32),
        grid=(3, num_tiles),
        in_specs=[
            pl.BlockSpec((tile_b, input_n), tile_map),     # latent features
            pl.BlockSpec((tile_b, 4), tile_map),           # clinical covariates
            pl.BlockSpec((2, input_n), fixed_map),         # [gamma1; beta1]
            pl.BlockSpec((input_n, l2), fixed_map),        # w1_latent
            pl.BlockSpec((4, l2), fixed_map),              # w1_clin
            pl.BlockSpec((4, l2), fixed_map),              # [b1; gamma2; beta2; w2]
        ],
        out_specs=pl.BlockSpec((tile_b, 1), out_map),
        scratch_shapes=[
            pltpu.VMEM((2, input_n), jnp.float32),         # sum(x), sum(x^2)
            pltpu.VMEM((1, input_n), jnp.float32),         # BN1 scale a1
            pltpu.VMEM((1, l2), jnp.float32),              # folded fc1 bias row
            pltpu.VMEM((2, l2), jnp.float32),              # sum(h), sum(h^2)
            pltpu.VMEM((2, l2), jnp.float32),              # [w2_eff; fc2 bias row]
            pltpu.VMEM((batch, l2), jnp.float32),          # full-batch hidden layer
        ],
        compiler_params=pltpu.CompilerParams(
            # Batch-tile axis stays "arbitrary": BN statistics accumulate across
            # tiles in a shared VMEM scratch (see v7x dual-core TODO above).
            dimension_semantics=("arbitrary", "arbitrary"),
            vmem_limit_bytes=_vmem_limit_bytes(
                batch, input_n, l2, tile_b,
                latent.dtype.itemsize, params["w1_latent"].dtype.itemsize),
        ),
    )(latent, clin, params["bn1"], params["w1_latent"],
      params["w1_clin"], params["head"])


def init_params(key, input_n, level_2_dim, w_dtype=jnp.float32):
    """PyTorch defaults: Linear ~ U(+/-1/sqrt(fan_in)); fc2 ~ U(+/-0.001);
    BatchNorm gamma=1, beta=0. Small rows are packed per the perf review:
      bn1  = [gamma1; beta1]          (2, input_n)
      head = [b1; gamma2; beta2; w2]  (4, level_2_dim)
    """
    k1, k2, k3 = jax.random.split(key, 3)
    fan_in1 = input_n + 4
    bound1 = float(1.0 / np.sqrt(fan_in1))
    w1 = jax.random.uniform(k1, (fan_in1, level_2_dim), jnp.float32,
                            minval=-bound1, maxval=bound1)    # stored transposed
    b1 = jax.random.uniform(k2, (level_2_dim,), jnp.float32,
                            minval=-bound1, maxval=bound1)
    w2 = jax.random.uniform(k3, (level_2_dim,), jnp.float32,
                            minval=-0.001, maxval=0.001)
    bn1 = jnp.stack([jnp.ones((input_n,), jnp.float32),
                     jnp.zeros((input_n,), jnp.float32)])
    head = jnp.stack([b1,
                      jnp.ones((level_2_dim,), jnp.float32),
                      jnp.zeros((level_2_dim,), jnp.float32),
                      w2])
    return {
        "bn1": bn1,                                      # (2, input_n)
        "w1_latent": w1[:input_n, :].astype(w_dtype),    # (input_n, level_2_dim)
        "w1_clin": w1[input_n:, :],                      # (4, level_2_dim) f32
        "head": head,                                    # (4, level_2_dim)
    }


def _reference(latent, clin, params):
    """Pure-JAX reference of the same forward (all math in f32)."""
    x = latent.astype(jnp.float32)
    g1, be1 = params["bn1"][0:1, :], params["bn1"][1:2, :]
    m1 = jnp.mean(x, axis=0, keepdims=True)
    v1 = jnp.mean((x - m1) ** 2, axis=0, keepdims=True)
    x_bn = (x - m1) / jnp.sqrt(v1 + EPS) * g1 + be1
    cat = jnp.concatenate([x_bn, clin.astype(jnp.float32)], axis=1)
    w1 = jnp.concatenate([params["w1_latent"].astype(jnp.float32),
                          params["w1_clin"]], axis=0)
    b1, g2, be2, w2 = (params["head"][i:i + 1, :] for i in range(4))
    h = jnp.tanh(cat @ w1 + b1)
    m2 = jnp.mean(h, axis=0, keepdims=True)
    v2 = jnp.mean((h - m2) ** 2, axis=0, keepdims=True)
    h_bn = (h - m2) / jnp.sqrt(v2 + EPS) * g2 + be2
    return h_bn @ w2.T


if __name__ == "__main__":
    # Small lane-dense demo shapes (feature dims multiples of 128); batch is
    # split into 4 tiles of 16 rows to exercise the pipelined multi-tile path.
    input_n = 128
    level_2_dim = 128
    batch = 64

    key = jax.random.PRNGKey(0)
    kx, kc, kp = jax.random.split(key, 3)
    latent = jax.random.normal(kx, (batch, input_n), jnp.float32)
    clin = jax.random.normal(kc, (batch, 4), jnp.float32)   # = cat(c1, c2, c3, c4)
    params = init_params(kp, input_n, level_2_dim)

    # f32 path: tight check against the pure-JAX reference.
    y = jax.block_until_ready(lfsurv_forward(latent, clin, params, tile_b=16))
    assert y.shape == (batch, 1)
    np.testing.assert_allclose(np.asarray(y),
                               np.asarray(_reference(latent, clin, params)),
                               rtol=1e-4, atol=2e-5)

    # bf16 HBM-traffic path (production default): x and w1_latent stored bf16,
    # all BN / elementwise math stays f32 (v5e-safe), MXU bf16 with f32 accum.
    # Tolerance is looser by design (bf16 storage/MXU rounding).
    latent16 = latent.astype(jnp.bfloat16)
    params16 = dict(params, w1_latent=params["w1_latent"].astype(jnp.bfloat16))
    y16 = jax.block_until_ready(lfsurv_forward(latent16, clin, params16, tile_b=16))
    np.testing.assert_allclose(np.asarray(y16),
                               np.asarray(_reference(latent16, clin, params16)),
                               rtol=5e-2, atol=1e-3)

    print("KERNEL_OK")
</pallas_src>

<mosaic_0001>
module attributes {stable_mosaic.version = 11 : i64} {
  func.func @_lfsurv_kernel(%arg0: i32, %arg1: i32, %arg2: memref<16x128xf32, #tpu.memory_space<vmem>>, %arg3: memref<16x4xf32, #tpu.memory_space<vmem>>, %arg4: memref<2x128xf32, #tpu.memory_space<vmem>>, %arg5: memref<128x128xf32, #tpu.memory_space<vmem>>, %arg6: memref<4x128xf32, #tpu.memory_space<vmem>>, %arg7: memref<4x128xf32, #tpu.memory_space<vmem>>, %arg8: memref<16x1xf32, #tpu.memory_space<vmem>>, %arg9: memref<2x128xf32, #tpu.memory_space<vmem>>, %arg10: memref<1x128xf32, #tpu.memory_space<vmem>>, %arg11: memref<1x128xf32, #tpu.memory_space<vmem>>, %arg12: memref<2x128xf32, #tpu.memory_space<vmem>>, %arg13: memref<2x128xf32, #tpu.memory_space<vmem>>, %arg14: memref<64x128xf32, #tpu.memory_space<vmem>>) attributes {dimension_semantics = [#tpu.dimension_semantics<arbitrary>, #tpu.dimension_semantics<arbitrary>], iteration_bounds = array<i64: 3, 4>, scalar_prefetch = 0 : i64, scratch_operands = 6 : i64, tpu.core_type = #tpu.core_type<tc>, window_params = [{transform_indices = @transform_0, window_bounds = array<i64: 16, 128>}, {transform_indices = @transform_1, window_bounds = array<i64: 16, 4>}, {pipeline_mode = #tpu.pipeline_mode<synchronous>, transform_indices = @transform_2, window_bounds = array<i64: 2, 128>}, {pipeline_mode = #tpu.pipeline_mode<synchronous>, transform_indices = @transform_3, window_bounds = array<i64: 128, 128>}, {pipeline_mode = #tpu.pipeline_mode<synchronous>, transform_indices = @transform_4, window_bounds = array<i64: 4, 128>}, {pipeline_mode = #tpu.pipeline_mode<synchronous>, transform_indices = @transform_5, window_bounds = array<i64: 4, 128>}, {transform_indices = @transform_6, window_bounds = array<i64: 16, 1>}]} {
    %c0_i32 = arith.constant 0 : i32
    %0 = arith.cmpi eq, %arg0, %c0_i32 : i32
    %c0_i32_0 = arith.constant 0 : i32
    %1 = arith.cmpi eq, %arg1, %c0_i32_0 : i32
    %2 = arith.andi %0, %1 : i1
    %3 = arith.extui %2 : i1 to i32
    %c0_i32_1 = arith.constant 0 : i32
    %4 = arith.cmpi ne, %3, %c0_i32_1 : i32
    scf.if %4 {
      %cst = arith.constant 0.000000e+00 : f32
      %24 = vector.broadcast %cst : f32 to vector<2x128xf32>
      %c0 = arith.constant 0 : index
      %c0_12 = arith.constant 0 : index
      %25 = vector.load %arg9[%c0, %c0_12] : memref<2x128xf32, #tpu.memory_space<vmem>>, vector<2x128xf32>
      tpu.vector_store %arg9[%c0, %c0_12], %24 {strides = array<i32>} : memref<2x128xf32, #tpu.memory_space<vmem>>, vector<2x128xf32>,
    } else {
    }
    %c0_i32_2 = arith.constant 0 : i32
    %5 = arith.cmpi eq, %arg0, %c0_i32_2 : i32
    %6 = arith.extui %5 : i1 to i32
    %c0_i32_3 = arith.constant 0 : i32
    %7 = arith.cmpi ne, %6, %c0_i32_3 : i32
    scf.if %7 {
      %c0 = arith.constant 0 : index
      %c0_12 = arith.constant 0 : index
      %24 = vector.load %arg2[%c0, %c0_12] : memref<16x128xf32, #tpu.memory_space<vmem>>, vector<16x128xf32>
      %c0_13 = arith.constant 0 : index
      %c0_14 = arith.constant 0 : index
      %25 = vector.load %arg9[%c0_13, %c0_14] : memref<2x128xf32, #tpu.memory_space<vmem>>, vector<1x128xf32>
      %cst = arith.constant dense<0.000000e+00> : vector<128xf32>
      %26 = vector.multi_reduction <add>, %24, %cst [0] : vector<16x128xf32> to vector<128xf32>
      %27 = vector.shape_cast %26 : vector<128xf32> to vector<1x128xf32>
      %28 = arith.addf %25, %27 : vector<1x128xf32>
      %c0_15 = arith.constant 0 : index
      %c0_16 = arith.constant 0 : index
      %29 = vector.load %arg9[%c0_15, %c0_16] : memref<2x128xf32, #tpu.memory_space<vmem>>, vector<1x128xf32>
      tpu.vector_store %arg9[%c0_15, %c0_16], %28 {strides = array<i32>} : memref<2x128xf32, #tpu.memory_space<vmem>>, vector<1x128xf32>,
      %c1 = arith.constant 1 : index
      %c0_17 = arith.constant 0 : index
      %30 = vector.load %arg9[%c1, %c0_17] : memref<2x128xf32, #tpu.memory_space<vmem>>, vector<1x128xf32>
      %31 = arith.mulf %24, %24 : vector<16x128xf32>
      %cst_18 = arith.constant dense<0.000000e+00> : vector<128xf32>
      %32 = vector.multi_reduction <add>, %31, %cst_18 [0] : vector<16x128xf32> to vector<128xf32>
      %33 = vector.shape_cast %32 : vector<128xf32> to vector<1x128xf32>
      %34 = arith.addf %30, %33 : vector<1x128xf32>
      %c1_19 = arith.constant 1 : index
      %c0_20 = arith.constant 0 : index
      %35 = vector.load %arg9[%c1_19, %c0_20] : memref<2x128xf32, #tpu.memory_space<vmem>>, vector<1x128xf32>
      tpu.vector_store %arg9[%c1_19, %c0_20], %34 {strides = array<i32>} : memref<2x128xf32, #tpu.memory_space<vmem>>, vector<1x128xf32>,
    } else {
    }
    %c1_i32 = arith.constant 1 : i32
    %8 = arith.cmpi eq, %arg0, %c1_i32 : i32
    %c0_i32_4 = arith.constant 0 : i32
    %9 = arith.cmpi eq, %arg1, %c0_i32_4 : i32
    %10 = arith.andi %8, %9 : i1
    %11 = arith.extui %10 : i1 to i32
    %c0_i32_5 = arith.constant 0 : i32
    %12 = arith.cmpi ne, %11, %c0_i32_5 : i32
    scf.if %12 {
      %c0 = arith.constant 0 : index
      %c0_12 = arith.constant 0 : index
      %24 = vector.load %arg4[%c0, %c0_12] : memref<2x128xf32, #tpu.memory_space<vmem>>, vector<1x128xf32>
      %c1 = arith.constant 1 : index
      %c0_13 = arith.constant 0 : index
      %25 = vector.load %arg4[%c1, %c0_13] : memref<2x128xf32, #tpu.memory_space<vmem>>, vector<1x128xf32>
      %c0_14 = arith.constant 0 : index
      %c0_15 = arith.constant 0 : index
      %26 = vector.load %arg9[%c0_14, %c0_15] : memref<2x128xf32, #tpu.memory_space<vmem>>, vector<1x128xf32>
      %cst = arith.constant 1.562500e-02 : f32
      %27 = vector.broadcast %cst : f32 to vector<1x128xf32>
      %28 = arith.mulf %26, %27 : vector<1x128xf32>
      %c1_16 = arith.constant 1 : index
      %c0_17 = arith.constant 0 : index
      %29 = vector.load %arg9[%c1_16, %c0_17] : memref<2x128xf32, #tpu.memory_space<vmem>>, vector<1x128xf32>
      %cst_18 = arith.constant 1.562500e-02 : f32
      %30 = vector.broadcast %cst_18 : f32 to vector<1x128xf32>
      %31 = arith.mulf %29, %30 : vector<1x128xf32>
      %32 = arith.mulf %28, %28 : vector<1x128xf32>
      %33 = arith.subf %31, %32 : vector<1x128xf32>
      %cst_19 = arith.constant 0.000000e+00 : f32
      %34 = vector.broadcast %cst_19 : f32 to vector<1x128xf32>
      %35 = arith.maximumf %33, %34 : vector<1x128xf32>
      %cst_20 = arith.constant 9.99999974E-6 : f32
      %36 = vector.broadcast %cst_20 : f32 to vector<1x128xf32>
      %37 = arith.addf %35, %36 : vector<1x128xf32>
      %38 = math.rsqrt %37 : vector<1x128xf32>
      %39 = arith.mulf %38, %24 : vector<1x128xf32>
      %c0_21 = arith.constant 0 : index
      %c0_22 = arith.constant 0 : index
      %40 = vector.load %arg10[%c0_21, %c0_22] : memref<1x128xf32, #tpu.memory_space<vmem>>, vector<1x128xf32>
      tpu.vector_store %arg10[%c0_21, %c0_22], %39 {strides = array<i32>} : memref<1x128xf32, #tpu.memory_space<vmem>>, vector<1x128xf32>,
      %41 = arith.mulf %28, %39 : vector<1x128xf32>
      %42 = arith.subf %25, %41 : vector<1x128xf32>
      %c0_23 = arith.constant 0 : index
      %c0_24 = arith.constant 0 : index
      %43 = vector.load %arg7[%c0_23, %c0_24] : memref<4x128xf32, #tpu.memory_space<vmem>>, vector<1x128xf32>
      %c0_25 = arith.constant 0 : index
      %c0_26 = arith.constant 0 : index
      %44 = vector.load %arg5[%c0_25, %c0_26] : memref<128x128xf32, #tpu.memory_space<vmem>>, vector<128x128xf32>
      %cst_27 = arith.constant dense<0.000000e+00> : vector<1x128xf32>
      %45 = tpu.matmul %42, %44, %cst_27 {dimension_numbers = #tpu.dot_dimension_numbers<[1], [0], [0], [1], [0, 0, 1, 1], [], []>} : vector<1x128xf32>, vector<128x128xf32>, vector<1x128xf32> -> vector<1x128xf32>
      %46 = arith.addf %43, %45 : vector<1x128xf32>
      %c0_28 = arith.constant 0 : index
      %c0_29 = arith.constant 0 : index
      %47 = vector.load %arg11[%c0_28, %c0_29] : memref<1x128xf32, #tpu.memory_space<vmem>>, vector<1x128xf32>
      tpu.vector_store %arg11[%c0_28, %c0_29], %46 {strides = array<i32>} : memref<1x128xf32, #tpu.memory_space<vmem>>, vector<1x128xf32>,
      %cst_30 = arith.constant 0.000000e+00 : f32
      %48 = vector.broadcast %cst_30 : f32 to vector<2x128xf32>
      %c0_31 = arith.constant 0 : index
      %c0_32 = arith.constant 0 : index
      %49 = vector.load %arg12[%c0_31, %c0_32] : memref<2x128xf32, #tpu.memory_space<vmem>>, vector<2x128xf32>
      tpu.vector_store %arg12[%c0_31, %c0_32], %48 {strides = array<i32>} : memref<2x128xf32, #tpu.memory_space<vmem>>, vector<2x128xf32>,
    } else {
    }
    %c1_i32_6 = arith.constant 1 : i32
    %13 = arith.cmpi eq, %arg0, %c1_i32_6 : i32
    %14 = arith.extui %13 : i1 to i32
    %c0_i32_7 = arith.constant 0 : i32
    %15 = arith.cmpi ne, %14, %c0_i32_7 : i32
    scf.if %15 {
      %c0 = arith.constant 0 : index
      %c0_12 = arith.constant 0 : index
      %24 = vector.load %arg2[%c0, %c0_12] : memref<16x128xf32, #tpu.memory_space<vmem>>, vector<16x128xf32>
      %c0_13 = arith.constant 0 : index
      %c0_14 = arith.constant 0 : index
      %25 = vector.load %arg10[%c0_13, %c0_14] : memref<1x128xf32, #tpu.memory_space<vmem>>, vector<1x128xf32>
      %26 = vector.broadcast %25 : vector<1x128xf32> to vector<16x128xf32>
      %27 = arith.mulf %24, %26 : vector<16x128xf32>
      %c0_15 = arith.constant 0 : index
      %c0_16 = arith.constant 0 : index
      %28 = vector.load %arg5[%c0_15, %c0_16] : memref<128x128xf32, #tpu.memory_space<vmem>>, vector<128x128xf32>
      %cst = arith.constant dense<0.000000e+00> : vector<16x128xf32>
      %29 = tpu.matmul %27, %28, %cst {dimension_numbers = #tpu.dot_dimension_numbers<[1], [0], [0], [1], [0, 0, 1, 1], [], []>} : vector<16x128xf32>, vector<128x128xf32>, vector<16x128xf32> -> vector<16x128xf32>
      %c0_17 = arith.constant 0 : index
      %c0_18 = arith.constant 0 : index
      %30 = vector.load %arg3[%c0_17, %c0_18] : memref<16x4xf32, #tpu.memory_space<vmem>>, vector<16x4xf32>
      %c0_19 = arith.constant 0 : index
      %c0_20 = arith.constant 0 : index
      %31 = vector.load %arg6[%c0_19, %c0_20] : memref<4x128xf32, #tpu.memory_space<vmem>>, vector<4x128xf32>
      %c0_21 = arith.constant 0 : index
      %c0_22 = arith.constant 0 : index
      %32 = vector.load %arg11[%c0_21, %c0_22] : memref<1x128xf32, #tpu.memory_space<vmem>>, vector<1x128xf32>
      %33 = vector.broadcast %32 : vector<1x128xf32> to vector<16x128xf32>
      %34 = arith.addf %29, %33 : vector<16x128xf32>
      %35 = vector.extract_strided_slice %30 {offsets = [0, 0], sizes = [16, 1], strides = [1, 1]} : vector<16x4xf32> to vector<16x1xf32>
      %36 = vector.extract_strided_slice %31 {offsets = [0, 0], sizes = [1, 128], strides = [1, 1]} : vector<4x128xf32> to vector<1x128xf32>
      %37 = vector.broadcast %35 : vector<16x1xf32> to vector<16x128xf32>
      %38 = vector.broadcast %36 : vector<1x128xf32> to vector<16x128xf32>
      %39 = arith.mulf %37, %38 : vector<16x128xf32>
      %40 = arith.addf %34, %39 : vector<16x128xf32>
      %41 = vector.extract_strided_slice %30 {offsets = [0, 1], sizes = [16, 1], strides = [1, 1]} : vector<16x4xf32> to vector<16x1xf32>
      %42 = vector.extract_strided_slice %31 {offsets = [1, 0], sizes = [1, 128], strides = [1, 1]} : vector<4x128xf32> to vector<1x128xf32>
      %43 = vector.broadcast %41 : vector<16x1xf32> to vector<16x128xf32>
      %44 = vector.broadcast %42 : vector<1x128xf32> to vector<16x128xf32>
      %45 = arith.mulf %43, %44 : vector<16x128xf32>
      %46 = arith.addf %40, %45 : vector<16x128xf32>
      %47 = vector.extract_strided_slice %30 {offsets = [0, 2], sizes = [16, 1], strides = [1, 1]} : vector<16x4xf32> to vector<16x1xf32>
      %48 = vector.extract_strided_slice %31 {offsets = [2, 0], sizes = [1, 128], strides = [1, 1]} : vector<4x128xf32> to vector<1x128xf32>
      %49 = vector.broadcast %47 : vector<16x1xf32> to vector<16x128xf32>
      %50 = vector.broadcast %48 : vector<1x128xf32> to vector<16x128xf32>
      %51 = arith.mulf %49, %50 : vector<16x128xf32>
      %52 = arith.addf %46, %51 : vector<16x128xf32>
      %53 = vector.extract_strided_slice %30 {offsets = [0, 3], sizes = [16, 1], strides = [1, 1]} : vector<16x4xf32> to vector<16x1xf32>
      %54 = vector.extract_strided_slice %31 {offsets = [3, 0], sizes = [1, 128], strides = [1, 1]} : vector<4x128xf32> to vector<1x128xf32>
      %55 = vector.broadcast %53 : vector<16x1xf32> to vector<16x128xf32>
      %56 = vector.broadcast %54 : vector<1x128xf32> to vector<16x128xf32>
      %57 = arith.mulf %55, %56 : vector<16x128xf32>
      %58 = arith.addf %52, %57 : vector<16x128xf32>
      %59 = math.tanh %58 : vector<16x128xf32>
      %c16_i32 = arith.constant 16 : i32
      %60 = arith.muli %arg1, %c16_i32 : i32
      %61 = tpu.assume_multiple %60, 8 : i32
      %62 = arith.index_cast %61 : i32 to index
      %c0_23 = arith.constant 0 : index
      %63 = vector.load %arg14[%62, %c0_23] : memref<64x128xf32, #tpu.memory_space<vmem>>, vector<16x128xf32>
      tpu.vector_store %arg14[%62, %c0_23], %59 {strides = array<i32>} : memref<64x128xf32, #tpu.memory_space<vmem>>, vector<16x128xf32>,
      %c0_24 = arith.constant 0 : index
      %c0_25 = arith.constant 0 : index
      %64 = vector.load %arg12[%c0_24, %c0_25] : memref<2x128xf32, #tpu.memory_space<vmem>>, vector<1x128xf32>
      %cst_26 = arith.constant dense<0.000000e+00> : vector<128xf32>
      %65 = vector.multi_reduction <add>, %59, %cst_26 [0] : vector<16x128xf32> to vector<128xf32>
      %66 = vector.shape_cast %65 : vector<128xf32> to vector<1x128xf32>
      %67 = arith.addf %64, %66 : vector<1x128xf32>
      %c0_27 = arith.constant 0 : index
      %c0_28 = arith.constant 0 : index
      %68 = vector.load %arg12[%c0_27, %c0_28] : memref<2x128xf32, #tpu.memory_space<vmem>>, vector<1x128xf32>
      tpu.vector_store %arg12[%c0_27, %c0_28], %67 {strides = array<i32>} : memref<2x128xf32, #tpu.memory_space<vmem>>, vector<1x128xf32>,
      %c1 = arith.constant 1 : index
      %c0_29 = arith.constant 0 : index
      %69 = vector.load %arg12[%c1, %c0_29] : memref<2x128xf32, #tpu.memory_space<vmem>>, vector<1x128xf32>
      %70 = arith.mulf %59, %59 : vector<16x128xf32>
      %cst_30 = arith.constant dense<0.000000e+00> : vector<128xf32>
      %71 = vector.multi_reduction <add>, %70, %cst_30 [0] : vector<16x128xf32> to vector<128xf32>
      %72 = vector.shape_cast %71 : vector<128xf32> to vector<1x128xf32>
      %73 = arith.addf %69, %72 : vector<1x128xf32>
      %c1_31 = arith.constant 1 : index
      %c0_32 = arith.constant 0 : index
      %74 = vector.load %arg12[%c1_31, %c0_32] : memref<2x128xf32, #tpu.memory_space<vmem>>, vector<1x128xf32>
      tpu.vector_store %arg12[%c1_31, %c0_32], %73 {strides = array<i32>} : memref<2x128xf32, #tpu.memory_space<vmem>>, vector<1x128xf32>,
    } else {
    }
    %c2_i32 = arith.constant 2 : i32
    %16 = arith.cmpi eq, %arg0, %c2_i32 : i32
    %c0_i32_8 = arith.constant 0 : i32
    %17 = arith.cmpi eq, %arg1, %c0_i32_8 : i32
    %18 = arith.andi %16, %17 : i1
    %19 = arith.extui %18 : i1 to i32
    %c0_i32_9 = arith.constant 0 : i32
    %20 = arith.cmpi ne, %19, %c0_i32_9 : i32
    scf.if %20 {
      %c1 = arith.constant 1 : index
      %c0 = arith.constant 0 : index
      %24 = vector.load %arg7[%c1, %c0] : memref<4x128xf32, #tpu.memory_space<vmem>>, vector<1x128xf32>
      %c2 = arith.constant 2 : index
      %c0_12 = arith.constant 0 : index
      %25 = vector.load %arg7[%c2, %c0_12] : memref<4x128xf32, #tpu.memory_space<vmem>>, vector<1x128xf32>
      %c3 = arith.constant 3 : index
      %c0_13 = arith.constant 0 : index
      %26 = vector.load %arg7[%c3, %c0_13] : memref<4x128xf32, #tpu.memory_space<vmem>>, vector<1x128xf32>
      %c0_14 = arith.constant 0 : index
      %c0_15 = arith.constant 0 : index
      %27 = vector.load %arg12[%c0_14, %c0_15] : memref<2x128xf32, #tpu.memory_space<vmem>>, vector<1x128xf32>
      %cst = arith.constant 1.562500e-02 : f32
      %28 = vector.broadcast %cst : f32 to vector<1x128xf32>
      %29 = arith.mulf %27, %28 : vector<1x128xf32>
      %c1_16 = arith.constant 1 : index
      %c0_17 = arith.constant 0 : index
      %30 = vector.load %arg12[%c1_16, %c0_17] : memref<2x128xf32, #tpu.memory_space<vmem>>, vector<1x128xf32>
      %cst_18 = arith.constant 1.562500e-02 : f32
      %31 = vector.broadcast %cst_18 : f32 to vector<1x128xf32>
      %32 = arith.mulf %30, %31 : vector<1x128xf32>
      %33 = arith.mulf %29, %29 : vector<1x128xf32>
      %34 = arith.subf %32, %33 : vector<1x128xf32>
      %cst_19 = arith.constant 0.000000e+00 : f32
      %35 = vector.broadcast %cst_19 : f32 to vector<1x128xf32>
      %36 = arith.maximumf %34, %35 : vector<1x128xf32>
      %cst_20 = arith.constant 9.99999974E-6 : f32
      %37 = vector.broadcast %cst_20 : f32 to vector<1x128xf32>
      %38 = arith.addf %36, %37 : vector<1x128xf32>
      %39 = math.rsqrt %38 : vector<1x128xf32>
      %40 = arith.mulf %39, %24 : vector<1x128xf32>
      %41 = arith.mulf %40, %26 : vector<1x128xf32>
      %c0_21 = arith.constant 0 : index
      %c0_22 = arith.constant 0 : index
      %42 = vector.load %arg13[%c0_21, %c0_22] : memref<2x128xf32, #tpu.memory_space<vmem>>, vector<1x128xf32>
      tpu.vector_store %arg13[%c0_21, %c0_22], %41 {strides = array<i32>} : memref<2x128xf32, #tpu.memory_space<vmem>>, vector<1x128xf32>,
      %43 = arith.mulf %29, %40 : vector<1x128xf32>
      %44 = arith.subf %25, %43 : vector<1x128xf32>
      %45 = arith.mulf %44, %26 : vector<1x128xf32>
      %c1_23 = arith.constant 1 : index
      %c0_24 = arith.constant 0 : index
      %46 = vector.load %arg13[%c1_23, %c0_24] : memref<2x128xf32, #tpu.memory_space<vmem>>, vector<1x128xf32>
      tpu.vector_store %arg13[%c1_23, %c0_24], %45 {strides = array<i32>} : memref<2x128xf32, #tpu.memory_space<vmem>>, vector<1x128xf32>,
    } else {
    }
    %c2_i32_10 = arith.constant 2 : i32
    %21 = arith.cmpi eq, %arg0, %c2_i32_10 : i32
    %22 = arith.extui %21 : i1 to i32
    %c0_i32_11 = arith.constant 0 : i32
    %23 = arith.cmpi ne, %22, %c0_i32_11 : i32
    scf.if %23 {
      %c16_i32 = arith.constant 16 : i32
      %24 = arith.muli %arg1, %c16_i32 : i32
      %25 = tpu.assume_multiple %24, 8 : i32
      %26 = arith.index_cast %25 : i32 to index
      %c0 = arith.constant 0 : index
      %27 = vector.load %arg14[%26, %c0] : memref<64x128xf32, #tpu.memory_space<vmem>>, vector<16x128xf32>
      %c0_12 = arith.constant 0 : index
      %c0_13 = arith.constant 0 : index
      %28 = vector.load %arg13[%c0_12, %c0_13] : memref<2x128xf32, #tpu.memory_space<vmem>>, vector<1x128xf32>
      %29 = vector.broadcast %28 : vector<1x128xf32> to vector<16x128xf32>
      %30 = arith.mulf %27, %29 : vector<16x128xf32>
      %c1 = arith.constant 1 : index
      %c0_14 = arith.constant 0 : index
      %31 = vector.load %arg13[%c1, %c0_14] : memref<2x128xf32, #tpu.memory_space<vmem>>, vector<1x128xf32>
      %32 = vector.broadcast %31 : vector<1x128xf32> to vector<16x128xf32>
      %33 = arith.addf %30, %32 : vector<16x128xf32>
      %cst = arith.constant dense<0.000000e+00> : vector<16xf32>
      %34 = vector.multi_reduction <add>, %33, %cst [1] : vector<16x128xf32> to vector<16xf32>
      %35 = vector.shape_cast %34 : vector<16xf32> to vector<16x1xf32>
      %c0_15 = arith.constant 0 : index
      %c0_16 = arith.constant 0 : index
      %36 = vector.load %arg8[%c0_15, %c0_16] : memref<16x1xf32, #tpu.memory_space<vmem>>, vector<16x1xf32>
      tpu.vector_store %arg8[%c0_15, %c0_16], %35 {strides = array<i32>} : memref<16x1xf32, #tpu.memory_space<vmem>>, vector<16x1xf32>,
    } else {
    }
    return
  }
  func.func @transform_0(%arg0: i32, %arg1: i32) -> (i32, i32) {
    %c2_i32 = arith.constant 2 : i32
    %0 = arith.cmpi slt, %arg0, %c2_i32 : i32
    %c0_i32 = arith.constant 0 : i32
    %1 = arith.select %0, %arg1, %c0_i32 : i32
    %c0_i32_0 = arith.constant 0 : i32
    %c0_i32_1 = arith.constant 0 : i32
    return %1, %c0_i32_0 : i32, i32
  }
  func.func @transform_1(%arg0: i32, %arg1: i32) -> (i32, i32) {
    %c2_i32 = arith.constant 2 : i32
    %0 = arith.cmpi slt, %arg0, %c2_i32 : i32
    %c0_i32 = arith.constant 0 : i32
    %1 = arith.select %0, %arg1, %c0_i32 : i32
    %c0_i32_0 = arith.constant 0 : i32
    %c0_i32_1 = arith.constant 0 : i32
    return %1, %c0_i32_0 : i32, i32
  }
  func.func @transform_2(%arg0: i32, %arg1: i32) -> (i32, i32) {
    %c0_i32 = arith.constant 0 : i32
    %c0_i32_0 = arith.constant 0 : i32
    %c0_i32_1 = arith.constant 0 : i32
    return %c0_i32, %c0_i32_0 : i32, i32
  }
  func.func @transform_3(%arg0: i32, %arg1: i32) -> (i32, i32) {
    %c0_i32 = arith.constant 0 : i32
    %c0_i32_0 = arith.constant 0 : i32
    %c0_i32_1 = arith.constant 0 : i32
    return %c0_i32, %c0_i32_0 : i32, i32
  }
  func.func @transform_4(%arg0: i32, %arg1: i32) -> (i32, i32) {
    %c0_i32 = arith.constant 0 : i32
    %c0_i32_0 = arith.constant 0 : i32
    %c0_i32_1 = arith.constant 0 : i32
    return %c0_i32, %c0_i32_0 : i32, i32
  }
  func.func @transform_5(%arg0: i32, %arg1: i32) -> (i32, i32) {
    %c0_i32 = arith.constant 0 : i32
    %c0_i32_0 = arith.constant 0 : i32
    %c0_i32_1 = arith.constant 0 : i32
    return %c0_i32, %c0_i32_0 : i32, i32
  }
  func.func @transform_6(%arg0: i32, %arg1: i32) -> (i32, i32) {
    %c2_i32 = arith.constant 2 : i32
    %0 = arith.cmpi eq, %arg0, %c2_i32 : i32
    %c0_i32 = arith.constant 0 : i32
    %1 = arith.select %0, %arg1, %c0_i32 : i32
    %c0_i32_0 = arith.constant 0 : i32
    %c0_i32_1 = arith.constant 0 : i32
    return %1, %c0_i32_0 : i32, i32
  }
}

</mosaic_0001>

<bundles_post_ra>
// kernel: lfsurv_forward.1
= control target key start
LH: loop header
LB: loop body
LE: loop exit
PB: predicated region body
PF: predicated region fallthrough
CT: control target
= control target key end

     0   :  { %11 = vsyncpa [#allocation9], 0  ;;  %s1227_s21 = smov 0   ;;  %s1229_s22 = smov 0   ;;  %s1381_s0 = inlined_call_operand.vmem [shape: f32[64,128], index: 0, kind: input, shape index: {}]   ;;  %s1382_s1 = inlined_call_operand.vmem [shape: f32[64,4], index: 1, kind: input, shape index: {}]   ;;  %s1383_s2 = inlined_call_operand.vmem [shape: f32[2,128], index: 2, kind: input, shape index: {}]   ;;  %s1384_s3 = inlined_call_operand.hbm [shape: f32[128,128], index: 3, kind: input, shape index: {}]   ;;  %s1385_s4 = inlined_call_operand.vmem [shape: f32[4,128], index: 4, kind: input, shape index: {}]   ;;  %s1386_s5 = inlined_call_operand.vmem [shape: f32[4,128], index: 5, kind: input, shape index: {}]   ;;  %s1387_s6 = inlined_call_operand.vmem [shape: f32[64,1], index: 6, kind: output, shape index: {}]  }
   0x1   :  { %s1231_s23 = smov 0   ;;  %s1233_s24 = smov 0  }
   0x2   :  { %s1235_s25 = smov 0  }
   0x3 LB: > { %s849_s26 = sadd.s32 4294967295, %s1179_s25   ;;  %s26_s27 = sadd.s32 1, %s1171_s23  ;;  %s1179_s25 = sphi %s1235_s25, %s17_s25   ;;  %s1175_s24 = sphi %s1233_s24, %s1399_s24   ;;  %s1171_s23 = sphi %s1231_s23, %s1398_s23   ;;  %s1167_s22 = sphi %s1229_s22, %s1397_s22   ;;  %s1163_s21 = sphi %s1227_s21, %s1396_s21  }
   0x4   : > { %p27_p0 = scmp.ge.s32.totalorder %s26_s27, 4  ;;  %s29_s28 = sadd.s32 1, %s1175_s24 }
   0x5   : > { %p851_p1 = scmp.ge.s32.totalorder %s1179_s25, 1  ;;  %p208_p2 = scmp.lt.s32.totalorder %s1179_s25, 13 }
   0x6   : > { %s1401_s27 = smov (%p27_p0, %s26_s27), 0  ;;  %s1403_s28 = smov (!%p27_p0, %s29_s28), %s1175_s24 }
   0x7   : > { %p1260_p3 = pnand %p851_p1, %p208_p2  ;;  %p31_p4 = scmp.ge.s32.totalorder %s1403_s28, 3 }
   0x8   : > { %p1264_p5 = scmp.eq.s32.totalorder %s849_s26, 0  ;;  %s1181_s7 = smov [#allocation8]  }
   0x9   : > { %s1391_s29 = scalar_select %p1260_p3, 1, 0 }
   0xa   : > { %s1392_s30 = scalar_select %p1264_p5, 1, 0 }
   0xb   : > { %p1038_p6 = pneg %p1260_p3  ;;  %s1405_s28 = smov (%p31_p4, %s1403_s28), 0 }
   0xc   : > { %s223_s8 = sshll.u32 %s1181_s7, 4  ;;  %s1109_s12 = scalar_lea.hbm %s1384_s3, 2048  ;;  %s224_s8 = int_to_ptr.vmem [resolvable:$true] %s223_s8 }
   0xd   : > { %p1274_p7 = pnand %p1264_p5, %p1038_p6  ;;  %p1110_p8 = scmp.ne.s32.totalorder %s1384_s3, %s1109_s12 }
   0xe   : > { %p1116_p12 = scmp.lt.u32.totalorder %s1109_s12, %s1384_s3 }
   0xf   : > { %p1111_p9 = pneg %p1274_p7 }
  0x11   : > { %p1112_p10 = pnand %p1111_p9, %p1110_p8 }
  0x13   : > { %p1113_p11 = pneg %p1112_p10 }
  0x15   : > { %p1118_p13 = pnand %p1116_p12, %p1113_p11 }
  0x17   : > { %1121 = shalt.err (!%p1118_p13)
}
  0x18   : > { %s1122_s17 = scalar_lea.vmem %s224_s8, 2048  ;;  %p1130_p4 = scmp.lt.s32.totalorder %s224_s8, %s224_s8 }
  0x19   : > { %p1123_p0 = scmp.ne.s32.totalorder %s224_s8, %s1122_s17  ;;  %p1131_p6 = scmp.lt.s32.totalorder %s1122_s17, %s1122_s17 }
  0x1b   : > { %p1125_p1 = pnand %p1123_p0, %p1111_p9  ;;  %p1132_p5 = por %p1131_p6, %p1130_p4 }
  0x1d   : > { %p1126_p2 = pneg %p1125_p1 }
  0x1f   : > { %p1133_p3 = pnand %p1132_p5, %p1126_p2 }
  0x21   : > { %1136 = shalt.err (!%p1133_p3)
}
  0x22   : > { %s1182_s18 = smov 128   ;;  %s1183_s19 = smov 8  }
  0x23   : > { %1041 = dma.hbm_to_vmem [thread:$0]  (!%p1274_p7), %s1384_s3, 2048, %s224_s8, [#allocation9], %s1182_s18, %s1182_s18, %s1183_s19  }
  0x24   : > { %p1394_p8 = scmp.ne.s32.totalorder %s1391_s29, 0 }
  0x25   : > { %p1395_p10 = scmp.ne.s32.totalorder (!%p1394_p8), %s1392_s30, 0 }
  0x26   : > { %271 = sbr.rel (%p1394_p8) target bundleno = 812 (0x32c), region = 44 }
  0x2d   : > { %1158 = dma.done.wait (%p1395_p10), [#allocation9], 2048  }
  0x2e   : > { %1160 = vsyncadd (%p1395_p10), [#allocation9], 4294965248  ;;  %p312_p3 = scmp.lt.s32.totalorder %s1167_s22, 2  ;;  %p332_p5 = scmp.eq.s32.totalorder %s1167_s22, 2 }
  0x2f   : > { %p342_p7 = scmp.eq.s32.totalorder %s1167_s22, 0  ;;  %p343_p9 = scmp.eq.s32.totalorder %s1163_s21, 0 }
  0x30   : > { %s313_s29 = scalar_select %p312_p3, %s1163_s21, 0 }
  0x31   : > { %s333_s7 = scalar_select %p332_p5, %s1163_s21, 0 }
  0x32   : > { %s856_s8 = sshll.u32 %s313_s29, 1  ;;  %p344_p11 = pnand %p343_p9, %p342_p7 }
  0x33   : > { %p315_p12 = scmp.lt.s32.totalorder %s856_s8, 7  ;;  %s860_s30 = sshll.u32 %s333_s7, 1  ;;  %v1184_v0 = vmov (!%p344_p11), 0.0  }
  0x34   : > { %p335_p13 = scmp.lt.s32.totalorder %s860_s30, 7  ;;  %347 = sbr.rel (%p344_p11) target bundleno = 59 (0x3b), region = 52  ;;  %348 = vst [vmem:[#allocation2] sm:$0x3] (!%p344_p11), %v1184_v0 }
  0x35   : > { %s1407_s8 = smov (!%p315_p12, %s856_s8), 7 }
  0x36   : > { %s1409_s30 = smov (!%p335_p13, %s860_s30), 7  ;;  %s857_s9 = sshll.u32 %s1407_s8, 3 }
  0x37   : > { %s1313_s12 = scalar_lea.vmem %s1381_s0, %s857_s9  ;;  %s1318_s15 = scalar_lea.vmem %s1382_s1, %s857_s9 }
  0x38   : > { %s861_s16 = sshll.u32 %s1409_s30, 3 }
  0x39   : > { %s1323_s19 = scalar_lea.vmem %s1387_s6, %s861_s16 }
  0x3b PF: > { %p862_p0 = scmp.ne.s32.totalorder %s1167_s22, 0 }
  0x3c   : > { %v352_v1 = vld [vmem:[%s1313_s12] sm:$0xff] (!%p862_p0)  ;;  %v353_v2 = vld [vmem:[%s1313_s12 + $0x8] sm:$0xff] (!%p862_p0) }
  0x3d   : > { %351 = sbr.rel (%p862_p0) target bundleno = 80 (0x50), region = 56  ;;  %v355_v3 = vadd.f32 (!%p862_p0), %v353_v2, %v352_v1  ;;  %v365_v4 = vmul.f32 (!%p862_p0), %v352_v1, %v352_v1  ;;  %v366_v5 = vmul.f32 (!%p862_p0), %v353_v2, %v353_v2  ;;  %v354_v16 = vld [vmem:[#allocation2] sm:$0x1] (!%p862_p0)  ;;  %v364_v19 = vld [vmem:[#allocation2 + $0x1] sm:$0x1] (!%p862_p0) }
  0x3f   : > { %v356_v6 = vrot.slane (!%p862_p0), %v355_v3, 4  ;;  %v367_v7 = vadd.f32 (!%p862_p0), %v366_v5, %v365_v4 }
  0x41   : > { %v357_v8 = vadd.f32 (!%p862_p0), %v356_v6, %v355_v3  ;;  %v368_v9 = vrot.slane (!%p862_p0), %v367_v7, 4 }
  0x43   : > { %v358_v10 = vrot.slane (!%p862_p0), %v357_v8, 2  ;;  %v369_v11 = vadd.f32 (!%p862_p0), %v368_v9, %v367_v7 }
  0x45   : > { %v359_v12 = vadd.f32 %v358_v10, %v357_v8  ;;  %v370_v13 = vrot.slane %v369_v11, 2 }
  0x47   : > { %v360_v14 = vrot.slane %v359_v12, 1  ;;  %v371_v15 = vadd.f32 %v370_v13, %v369_v11 }
  0x49   : > { %v361_v17 = vadd.f32 %v360_v14, %v359_v12  ;;  %v372_v18 = vrot.slane %v371_v15, 1 }
  0x4b   : > { %v362_v20 = vadd.f32 %v361_v17, %v354_v16  ;;  %v373_v21 = vadd.f32 %v372_v18, %v371_v15 }
  0x4d   : > { %363 = vst [vmem:[#allocation2] sm:$0x1] %v362_v20  ;;  %v374_v22 = vadd.f32 %v373_v21, %v364_v19 }
  0x4f   : > { %375 = vst [vmem:[#allocation2 + $0x1] sm:$0x1] %v374_v22 }
  0x50 PF: > { %p376_p1 = scmp.eq.s32.totalorder %s1167_s22, 1 }
  0x52   : > { %p377_p2 = pnand %p376_p1, %p343_p9 }
  0x53   : > { %v397_v23 = vld [vmem:[#allocation8] sm:$0xff] (!%p377_p2)  ;;  %v398_v24 = vld [vmem:[#allocation8 + $0x8] sm:$0xff] (!%p377_p2)  ;;  %v399_v25 = vld [vmem:[#allocation8 + $0x10] sm:$0xff] (!%p377_p2)  ;;  %v1185_v26 = vmov (!%p377_p2), 0.0|0.0   ;;  %vm1186_vm0 = vmmov (!%p377_p2), 0   ;;  %v1187_v29 = vmov (!%p377_p2), 0.0  }
  0x54   : > { %380 = sbr.rel (%p377_p2) target bundleno = 332 (0x14c), region = 60  ;;  %978 = vmatprep.subr.bf16.mxu0 (!%p377_p2), %v1185_v26  ;;  %v979_v27 = vpack.c.bf16 (!%p377_p2), %v398_v24, %v397_v23  ;;  %v400_v28 = vld [vmem:[#allocation8 + $0x18] sm:$0xff] (!%p377_p2)  ;;  %940 = vmatprep.mubr.msk.f32.mxu0 (!%p377_p2), %vm1186_vm0, %v1187_v29  ;;  %485 = vst [vmem:[#allocation5] sm:$0x3] (!%p377_p2), %v1187_v29  ;;  %v401_v31 = vld [vmem:[#allocation8 + $0x20] sm:$0xff] (!%p377_p2)  ;;  %v402_v32 = vld [vmem:[#allocation8 + $0x28] sm:$0xff] (!%p377_p2) }
  0x55   : > { %v982_v30 = vpack.c.bf16 (!%p377_p2), %v400_v28, %v399_v25  ;;  %v383_v33 = vld [vmem:[#allocation2] sm:$0x1] (!%p377_p2)  ;;  %v985_v35 = vpack.c.bf16 (!%p377_p2), %v402_v32, %v401_v31  ;;  %v403_v38 = vld [vmem:[#allocation8 + $0x30] sm:$0xff] (!%p377_p2)  ;;  %v405_v43 = vld [vmem:[#allocation8 + $0x40] sm:$0xff] (!%p377_p2) }
  0x56   : > { %980 = vmatpush3.bf16.msra.mxu0 (!%p377_p2), %v979_v27  ;;  %v385_v34 = vld [vmem:[#allocation2 + $0x1] sm:$0x1] (!%p377_p2)  ;;  %v384_v36 = vmul.f32 (!%p377_p2), 0.015625, %v383_v33  ;;  %v406_v44 = vld [vmem:[#allocation8 + $0x48] sm:$0xff] (!%p377_p2)  ;;  %v407_v48 = vld [vmem:[#allocation8 + $0x50] sm:$0xff] (!%p377_p2) }
  0x57   : > { %981 = vmatprep.subr.bf16.mxu0 (!%p377_p2), %v1185_v26  ;;  %v386_v37 = vmul.f32 (!%p377_p2), 0.015625, %v385_v34  ;;  %v404_v39 = vld [vmem:[#allocation8 + $0x38] sm:$0xff] (!%p377_p2)  ;;  %v991_v46 = vpack.c.bf16 (!%p377_p2), %v406_v44, %v405_v43  ;;  %v409_v51 = vld [vmem:[#allocation8 + $0x60] sm:$0xff] (!%p377_p2)  ;;  %v410_v52 = vld [vmem:[#allocation8 + $0x68] sm:$0xff] (!%p377_p2) }
  0x58   : > { %v387_v40 = vmul.f32 (!%p377_p2), %v384_v36, %v384_v36  ;;  %v988_v41 = vpack.c.bf16 (!%p377_p2), %v404_v39, %v403_v38  ;;  %v408_v49 = vld [vmem:[#allocation8 + $0x58] sm:$0xff] (!%p377_p2)  ;;  %v997_v53 = vpack.c.bf16 (!%p377_p2), %v410_v52, %v409_v51  ;;  %v411_v54 = vld [vmem:[#allocation8 + $0x70] sm:$0xff] (!%p377_p2) }
  0x59   : > { %v994_v50 = vpack.c.bf16 (!%p377_p2), %v408_v49, %v407_v48  ;;  %v412_v55 = vld [vmem:[#allocation8 + $0x78] sm:$0xff] (!%p377_p2) }
  0x5a   : > { %983 = vmatpush3.bf16.msra.mxu0 (!%p377_p2), %v982_v30  ;;  %v388_v42 = vsub.f32 (!%p377_p2), %v386_v37, %v387_v40  ;;  %v381_v56 = vld [vmem:[%s1383_s2] sm:$0x1] (!%p377_p2)  ;;  %v1000_v58 = vpack.c.bf16 (!%p377_p2), %v412_v55, %v411_v54  ;;  %v382_v60 = vld [vmem:[%s1383_s2 + $0x1] sm:$0x1] (!%p377_p2) }
  0x5b   : > { %984 = vmatprep.subr.bf16.mxu0 %v1185_v26  ;;  %v396_v63 = vld [vmem:[%s1386_s5] sm:$0x1] }
  0x5c   : > { %v389_v45 = vmax.f32 %v388_v42, 0.0 }
  0x5e   : > { %986 = vmatpush3.bf16.msra.mxu0 %v985_v35  ;;  %v390_v47 = vadd.f32 1e-05, %v389_v45 }
  0x5f   : > { %987 = vmatprep.subr.bf16.mxu0 %v1185_v26 }
  0x60   : > { %1095 = vrsqrt.f32 %v390_v47 }
  0x62   : > { %989 = vmatpush3.bf16.msra.mxu0 %v988_v41 }
  0x63   : > { %990 = vmatprep.subr.bf16.mxu0 %v1185_v26 }
  0x66   : > { %992 = vmatpush3.bf16.msra.mxu0 %v991_v46 }
  0x67   : > { %993 = vmatprep.subr.bf16.mxu0 %v1185_v26 }
  0x6a   : > { %995 = vmatpush3.bf16.msra.mxu0 %v994_v50  ;;  %v1096_v57 = vpop.eup %1095 }
  0x6b   : > { %996 = vmatprep.subr.bf16.mxu0 %v1185_v26  ;;  %v392_v59 = vmul.f32 %v1096_v57, %v381_v56 }
  0x6d   : > { %393 = vst [vmem:[#allocation3] sm:$0x1] %v392_v59  ;;  %v394_v61 = vmul.f32 %v392_v59, %v384_v36 }
  0x6e   : > { %998 = vmatpush3.bf16.msra.mxu0 %v997_v53 }
  0x6f   : > { %999 = vmatprep.subr.bf16.mxu0 %v1185_v26  ;;  %v395_v62 = vsub.f32 %v382_v60, %v394_v61 }
  0x72   : > { %1001 = vmatpush3.bf16.msra.mxu0 %v1000_v58 }
  0x75   : > { %941 = vmatmul.mubr.f32.vlgmr.msra.gmra.mrb[0].mxu0 %v395_v62 }
 0x148   : > { %v479_v0 = vpop.f32.mrb[0].mxu0 }
 0x149   : > { %v483_v1 = vadd.f32 %v479_v0, %v396_v63  ;;  %v942_v2 = vpop.f32.mrb[1].mxu0 }
 0x14b   : > { %484 = vst [vmem:[#allocation4] sm:$0x1] %v483_v1 }
 0x14c PF: > { %p863_p4 = scmp.ne.s32.totalorder %s1167_s22, 1 }
 0x14d   : > { %v500_v3 = vld [vmem:[#allocation8] sm:$0xff] (!%p863_p4)  ;;  %v501_v4 = vld [vmem:[#allocation8 + $0x8] sm:$0xff] (!%p863_p4)  ;;  %v502_v5 = vld [vmem:[#allocation8 + $0x10] sm:$0xff] (!%p863_p4)  ;;  %v1188_v8 = vmov (!%p863_p4), 1   ;;  %v1189_v9 = vmov (!%p863_p4), 0   ;;  %v1190_v27 = vmov (!%p863_p4), 2   ;;  %v611_v38 = vlaneseq (!%p863_p4) }
 0x14e   : > { %488 = sbr.rel (%p863_p4) target bundleno = 621 (0x26d), region = 64  ;;  %v1002_v6 = vpack.c.bf16 (!%p863_p4), %v501_v4, %v500_v3  ;;  %v503_v7 = vld [vmem:[#allocation8 + $0x18] sm:$0xff] (!%p863_p4)  ;;  %1098 = vset.pattern.permute.xlu1 (!%p863_p4), %v1188_v8  ;;  %1097 = vset.pattern.permute.xlu0 (!%p863_p4), %v1189_v9  ;;  %v504_v11 = vld [vmem:[#allocation8 + $0x20] sm:$0xff] (!%p863_p4)  ;;  %v505_v12 = vld [vmem:[#allocation8 + $0x28] sm:$0xff] (!%p863_p4)  ;;  %v1191_v31 = vmov (!%p863_p4), 3   ;;  %s866_s11 = sshll.u32 (!%p863_p4), %s1163_s21, 4 }
 0x14f   : > { %v1006_v10 = vpack.c.bf16 (!%p863_p4), %v503_v7, %v502_v5  ;;  %v1010_v13 = vpack.c.bf16 (!%p863_p4), %v505_v12, %v504_v11  ;;  %v506_v14 = vld [vmem:[#allocation8 + $0x30] sm:$0xff] (!%p863_p4)  ;;  %v489_v15 = vld [vmem:[%s1313_s12] sm:$0xff] (!%p863_p4)  ;;  %v517_v20 = vld [vmem:[%s1318_s15 + $0x8] sm:$0xff] (!%p863_p4)  ;;  %v612_v41 = vshrl.u32 (!%p863_p4), %v611_v38, 7 }
 0x150   : > { %1003 = vmatprep.subr.bf16.mxu0 (!%p863_p4), %v1002_v6  ;;  %v507_v16 = vld [vmem:[#allocation8 + $0x38] sm:$0xff] (!%p863_p4)  ;;  %v508_v22 = vld [vmem:[#allocation8 + $0x40] sm:$0xff] (!%p863_p4)  ;;  %v509_v23 = vld [vmem:[#allocation8 + $0x48] sm:$0xff] (!%p863_p4) }
 0x151   : > { %1005 = vmatpush3.bf16.msra.mxu0 (!%p863_p4), %v1002_v6  ;;  %v864_v17 = vld [vmem:[#allocation3] ss:$0 sm:$0xff] (!%p863_p4)  ;;  %v1014_v21 = vpack.c.bf16 (!%p863_p4), %v507_v16, %v506_v14  ;;  %v1018_v24 = vpack.c.bf16 (!%p863_p4), %v509_v23, %v508_v22  ;;  %v510_v25 = vld [vmem:[#allocation8 + $0x50] sm:$0xff] (!%p863_p4)  ;;  %v512_v29 = vld [vmem:[#allocation8 + $0x60] sm:$0xff] (!%p863_p4)  ;;  %v613_v43 = vsub.s32 (!%p863_p4), 0, %v612_v41  ;;  %v629_v46 = vsub.s32 (!%p863_p4), 1, %v612_v41 }
 0x152   : > { %1007 = vmatprep.subr.bf16.mxu0 (!%p863_p4), %v1006_v10  ;;  %v516_v18 = vld [vmem:[%s1318_s15] sm:$0xff] (!%p863_p4)  ;;  %v498_v19 = vmul.f32 (!%p863_p4), %v864_v17, %v489_v15  ;;  %v513_v30 = vld [vmem:[#allocation8 + $0x68] sm:$0xff] (!%p863_p4)  ;;  %v514_v33 = vld [vmem:[#allocation8 + $0x70] sm:$0xff] (!%p863_p4)  ;;  %v645_v49 = vsub.s32 (!%p863_p4), 2, %v612_v41  ;;  %v661_v51 = vsub.s32 (!%p863_p4), 3, %v612_v41 }
 0x153   : > { %620 = vperm.xlu1 (!%p863_p4), %1098, %v516_v18   ;;  %603 = vperm.xlu0 (!%p863_p4), %1097, %v516_v18   ;;  %v511_v26 = vld [vmem:[#allocation8 + $0x58] sm:$0xff] (!%p863_p4)  ;;  %v1026_v32 = vpack.c.bf16 (!%p863_p4), %v513_v30, %v512_v29  ;;  %v490_v36 = vld [vmem:[%s1313_s12 + $0x8] sm:$0xff] (!%p863_p4)  ;;  %s670_s12 = scalar_lea.vmem (!%p863_p4), [#allocation7], %s866_s11 }
 0x154   : > { %975 = vmatprep.mubr.f32.mxu0 (!%p863_p4), %v498_v19  ;;  %v1022_v28 = vpack.c.bf16 (!%p863_p4), %v511_v26, %v510_v25  ;;  %v515_v34 = vld [vmem:[#allocation8 + $0x78] sm:$0xff] (!%p863_p4)  ;;  %v499_v37 = vmul.f32 (!%p863_p4), %v864_v17, %v490_v36 }
 0x155   : > { %1009 = vmatpush3.bf16.msra.mxu0 %v1006_v10  ;;  %v1030_v35 = vpack.c.bf16 %v515_v34, %v514_v33  ;;  %v518_v45 = vld [vmem:[%s1385_s4] sm:$0xf]  ;;  %v673_v29 = vld [vmem:[#allocation5] sm:$0x1] }
 0x156   : > { %1011 = vmatprep.subr.bf16.mxu0 %v1010_v13  ;;  %v614_v48 = vrot.slane %v518_v45, %v613_v43  ;;  %v865_v52 = vld [vmem:[#allocation4] ss:$0 sm:$0xff]  ;;  %v630_v53 = vrot.slane %v518_v45, %v629_v46  ;;  %v646_v58 = vrot.slane %v518_v45, %v645_v49  ;;  %v662_v59 = vrot.slane %v518_v45, %v661_v51 }
 0x157   : > { %624 = vperm.xlu1 %1098, %v517_v20   ;;  %608 = vperm.xlu0 %1097, %v517_v20  }
 0x159   : > { %1013 = vmatpush3.bf16.msra.mxu0 %v1010_v13 }
 0x15a   : > { %1015 = vmatprep.subr.bf16.mxu0 %v1014_v21 }
 0x15b   : > { %1099 = vset.pattern.permute.xlu0 %v1190_v27  ;;  %1100 = vset.pattern.permute.xlu1 %v1190_v27 }
 0x15c   : > { %636 = vperm.xlu0 %1099, %v516_v18   ;;  %640 = vperm.xlu1 %1100, %v517_v20  }
 0x15d   : > { %1017 = vmatpush3.bf16.msra.mxu0 %v1014_v21 }
 0x15e   : > { %1019 = vmatprep.subr.bf16.mxu0 %v1018_v24 }
 0x160   : > { %1102 = vset.pattern.permute.xlu0 %v1191_v31  ;;  %1101 = vset.pattern.permute.xlu1 %v1191_v31 }
 0x161   : > { %1021 = vmatpush3.bf16.msra.mxu0 %v1018_v24  ;;  %656 = vperm.xlu0 %1102, %v517_v20  }
 0x162   : > { %1023 = vmatprep.subr.bf16.mxu0 %v1022_v28  ;;  %652 = vperm.xlu1 %1101, %v516_v18  }
 0x165   : > { %1025 = vmatpush3.bf16.msra.mxu0 %v1022_v28 }
 0x166   : > { %1027 = vmatprep.subr.bf16.mxu0 %v1026_v32 }
 0x169   : > { %1029 = vmatpush3.bf16.msra.mxu0 %v1026_v32  ;;  %v683_v32 = vld [vmem:[#allocation5 + $0x1] sm:$0x1] }
 0x16a   : > { %1031 = vmatprep.subr.bf16.mxu0 %v1030_v35 }
 0x16d   : > { %1033 = vmatpush3.bf16.msra.mxu0 %v1030_v35 }
 0x170   : > { %976 = vmatmul.mubr.f32.vlgmr.msra.gmra.mrb[0].mxu0 %v499_v37 }
 0x1d2   : > { %v604_v39 = vpop.permute.xlu0 %603  ;;  %v621_v40 = vpop.permute.xlu1 %620 }
 0x1d3   : > { %v615_v60 = vmul.f32 %v614_v48, %v604_v39  ;;  %v631_v2 = vmul.f32 %v630_v53, %v621_v40 }
 0x1d6   : > { %v609_v42 = vpop.permute.xlu0 %608  ;;  %v625_v44 = vpop.permute.xlu1 %624 }
 0x1d7   : > { %v616_v55 = vmul.f32 %v614_v48, %v609_v42  ;;  %v632_v63 = vmul.f32 %v630_v53, %v625_v44 }
 0x1db   : > { %v637_v47 = vpop.permute.xlu0 %636  ;;  %v641_v50 = vpop.permute.xlu1 %640 }
 0x1dc   : > { %v648_v5 = vmul.f32 %v646_v58, %v641_v50  ;;  %v647_v8 = vmul.f32 %v646_v58, %v637_v47 }
 0x1e0   : > { %v657_v62 = vpop.permute.xlu0 %656 }
 0x1e1   : > { %v653_v1 = vpop.permute.xlu1 %652  ;;  %v664_v6 = vmul.f32 %v662_v59, %v657_v62 }
 0x1e2   : > { %v663_v9 = vmul.f32 %v662_v59, %v653_v1 }
 0x243   : > { %v977_v54 = vpop.f32.mrb[0].mxu0 }
 0x244   : > { %v598_v56 = vadd.f32 %v977_v54, %v865_v52  ;;  %v592_v57 = vpop.f32.mrb[1].mxu0 }
 0x245   : > { %v593_v61 = vadd.f32 %v865_v52, %v592_v57 }
 0x246   : > { %v618_v0 = vadd.f32 %v616_v55, %v598_v56 }
 0x247   : > { %v617_v3 = vadd.f32 %v615_v60, %v593_v61 }
 0x248   : > { %v634_v4 = vadd.f32 %v632_v63, %v618_v0 }
 0x249   : > { %v633_v7 = vadd.f32 %v631_v2, %v617_v3 }
 0x24a   : > { %v650_v10 = vadd.f32 %v648_v5, %v634_v4 }
 0x24b   : > { %v649_v11 = vadd.f32 %v647_v8, %v633_v7 }
 0x24c   : > { %v666_v12 = vadd.f32 %v664_v6, %v650_v10 }
 0x24d   : > { %v665_v13 = vadd.f32 %v663_v9, %v649_v11 }
 0x24e   : > { %1103 = vtanh.f32 %v666_v12 }
 0x24f   : > { %1105 = vtanh.f32 %v665_v13 }
 0x258   : > { %v1104_v14 = vpop.eup %1103 }
 0x259   : > { %v1106_v15 = vpop.eup %1105  ;;  %672 = vst [vmem:[%s670_s12 + $0x8] sm:$0xff] %v1104_v14  ;;  %v685_v16 = vmul.f32 %v1104_v14, %v1104_v14 }
 0x25a   : > { %671 = vst [vmem:[%s670_s12] sm:$0xff] %v1106_v15  ;;  %v674_v17 = vadd.f32 %v1106_v15, %v1104_v14  ;;  %v684_v18 = vmul.f32 %v1106_v15, %v1106_v15 }
 0x25c   : > { %v675_v19 = vrot.slane %v674_v17, 4  ;;  %v686_v20 = vadd.f32 %v685_v16, %v684_v18 }
 0x25e   : > { %v676_v21 = vadd.f32 %v675_v19, %v674_v17  ;;  %v687_v22 = vrot.slane %v686_v20, 4 }
 0x260   : > { %v677_v23 = vrot.slane %v676_v21, 2  ;;  %v688_v24 = vadd.f32 %v687_v22, %v686_v20 }
 0x262   : > { %v678_v25 = vadd.f32 %v677_v23, %v676_v21  ;;  %v689_v26 = vrot.slane %v688_v24, 2 }
 0x264   : > { %v679_v27 = vrot.slane %v678_v25, 1  ;;  %v690_v28 = vadd.f32 %v689_v26, %v688_v24 }
 0x266   : > { %v680_v30 = vadd.f32 %v679_v27, %v678_v25  ;;  %v691_v31 = vrot.slane %v690_v28, 1 }
 0x268   : > { %v681_v33 = vadd.f32 %v680_v30, %v673_v29  ;;  %v692_v34 = vadd.f32 %v691_v31, %v690_v28 }
 0x26a   : > { %682 = vst [vmem:[#allocation5] sm:$0x1] %v681_v33  ;;  %v693_v35 = vadd.f32 %v692_v34, %v683_v32 }
 0x26c   : > { %694 = vst [vmem:[#allocation5 + $0x1] sm:$0x1] %v693_v35 }
 0x26d PF: > { %p696_p6 = pnand %p343_p9, %p332_p5 }
 0x26e   : > { %v700_v44 = vld [vmem:[%s1386_s5 + $0x1] sm:$0x1] (!%p696_p6)  ;;  %v702_v46 = vld [vmem:[%s1386_s5 + $0x3] sm:$0x1] (!%p696_p6)  ;;  %v701_v48 = vld [vmem:[%s1386_s5 + $0x2] sm:$0x1] (!%p696_p6) }
 0x26f   : > { %699 = sbr.rel (%p696_p6) target bundleno = 656 (0x290), region = 68 }
 0x271   : > { %v703_v36 = vld [vmem:[#allocation5] sm:$0x1] (!%p696_p6) }
 0x272   : > { %v704_v37 = vmul.f32 (!%p696_p6), 0.015625, %v703_v36 }
 0x273   : > { %v705_v38 = vld [vmem:[#allocation5 + $0x1] sm:$0x1] (!%p696_p6) }
 0x274   : > { %v706_v39 = vmul.f32 (!%p696_p6), 0.015625, %v705_v38  ;;  %v707_v40 = vmul.f32 (!%p696_p6), %v704_v37, %v704_v37 }
 0x276   : > { %v708_v41 = vsub.f32 %v706_v39, %v707_v40 }
 0x278   : > { %v709_v42 = vmax.f32 %v708_v41, 0.0 }
 0x27a   : > { %v710_v43 = vadd.f32 1e-05, %v709_v42 }
 0x27c   : > { %1107 = vrsqrt.f32 %v710_v43 }
 0x286   : > { %v1108_v45 = vpop.eup %1107 }
 0x287   : > { %v712_v47 = vmul.f32 %v1108_v45, %v700_v44 }
 0x289   : > { %v713_v49 = vmul.f32 %v712_v47, %v702_v46  ;;  %v715_v50 = vmul.f32 %v712_v47, %v704_v37 }
 0x28b   : > { %714 = vst [vmem:[#allocation6] sm:$0x1] %v713_v49  ;;  %v716_v51 = vsub.f32 %v701_v48, %v715_v50 }
 0x28d   : > { %v717_v52 = vmul.f32 %v716_v51, %v702_v46 }
 0x28f   : > { %718 = vst [vmem:[#allocation6 + $0x1] sm:$0x1] %v717_v52 }
 0x290 PF: > { %p867_p8 = scmp.ne.s32.totalorder %s1167_s22, 2 }
 0x291   : > { %s868_s20 = sshll.u32 (!%p867_p8), %s1163_s21, 4  ;;  %vm744_vm1 = vcmask (!%p867_p8), 7168  }
 0x292   : > { %721 = sbr.rel (%p867_p8) target bundleno = 812 (0x32c), region = 72  ;;  %v869_v53 = vld [vmem:[#allocation6] ss:$0 sm:$0xff] (!%p867_p8)  ;;  %s723_s26 = scalar_lea.vmem (!%p867_p8), [#allocation7], %s868_s20 }
 0x293   : > { %v724_v54 = vld [vmem:[%s723_s26] sm:$0xff] (!%p867_p8)  ;;  %v725_v56 = vld [vmem:[%s723_s26 + $0x8] sm:$0xff] (!%p867_p8) }
 0x294   : > { %v731_v57 = vmul.f32 (!%p867_p8), %v869_v53, %v724_v54  ;;  %v732_v58 = vmul.f32 (!%p867_p8), %v869_v53, %v725_v56 }
 0x296   : > { %v870_v55 = vld [vmem:[#allocation6 + $0x1] ss:$0 sm:$0xff] (!%p867_p8) }
 0x297   : > { %v738_v59 = vadd.f32 (!%p867_p8), %v870_v55, %v731_v57  ;;  %v739_v60 = vadd.f32 (!%p867_p8), %v870_v55, %v732_v58 }
 0x299   : > { %740 = vadd.xlane.f32.xlu0 %v738_v59 }
 0x29d   : > { %742 = vadd.xlane.f32.xlu0 %v739_v60 }
 0x326   : > { %v741_v61 = vpop.xlane.xlu0 %740 }
 0x327   : > { %745 = vst.msk [vmem:[%s1323_s19] sm:$0xff] %vm744_vm1, %v741_v61 }
 0x32a   : > { %v743_v62 = vpop.xlane.xlu0 %742 }
 0x32b   : > { %746 = vst.msk [vmem:[%s1323_s19 + $0x8] sm:$0xff] %vm744_vm1, %v743_v62 }
 0x32c PF: > { %s17_s25 = sadd.s32 1, %s1179_s25   ;;  %s1396_s21 = smov %s1171_s23 }
 0x32d   : > { %p14_p10 = scmp.ge.s32.totalorder %s17_s25, 14   ;;  %s1397_s22 = smov %s1175_s24 }
 0x32e   : > { %s1398_s23 = smov %s1401_s27  ;;  %s1399_s24 = smov %s1405_s28 }
 0x32f   :  { %16 = sbr.rel (!%p14_p10) target bundleno = 3 (0x3), region = 108 }
 0x336   :  { %775 = vsyncpa [#allocation9], 1 }
 0x337   :  { %777 = vsyncpa [#allocation9 + $0x1], 1 }

</bundles_post_ra>
